<compile_context>
chip_gen: v5e
topology: v5e:2x2
jax: 0.10.0
libtpu: 0.0.40
codegen_flags: <defaults>
</compile_context>

<pallas_src>
import jax
import jax.numpy as jnp
from jax.experimental import pallas as pl
from jax.experimental.pallas import tpu as pltpu


# ---------------------------------------------------------------------------
# helpers
# ---------------------------------------------------------------------------
def _round_up(x, m):
    return ((x + m - 1) // m) * m


def _choose_atom_tile(n_atoms, m_pad):
    # keep the f32 one-hot tile (TN, M_pad) around <= 4 MiB so the kernel stays
    # comfortably under the default scoped-VMEM limits on every generation.
    budget_elems = 1 << 20
    tn = (budget_elems // m_pad) // 128 * 128
    tn = max(128, min(tn, 1024))
    tn = min(tn, _round_up(n_atoms, 128))
    return tn


# ---------------------------------------------------------------------------
# fused kernel factory
#   inputs : counts (1,M_pad),
#            [e_pred_i (De,M_pad), e_true_i (De,M_pad)] * n_energy,
#            [f_pred (D,TN), f_true (D,TN), idx (TN,1)]          (if force)
#   outputs: [energy_loss_i (1,M_pad)] * n_energy,
#            [force_loss (1,M_pad)]                              (if force)
#            total_loss (1,M_pad)
#   scratch: acc (1,M_pad) f32                                   (if force)
# ---------------------------------------------------------------------------
def _make_fused_kernel(*, n_energy, has_force, energy_weights, force_weight,
                       m_pad, tn, prefactor):
    n_in = 1 + 2 * n_energy + (3 if has_force else 0)
    n_out = n_energy + (1 if has_force else 0) + 1

    def kernel(*refs):
        in_refs = refs[:n_in]
        out_refs = refs[n_in:n_in + n_out]
        scratch_refs = refs[n_in + n_out:]

        counts_ref = in_refs[0]
        e_pairs = [(in_refs[1 + 2 * i], in_refs[2 + 2 * i]) for i in range(n_energy)]
        e_loss_refs = list(out_refs[:n_energy])
        total_ref = out_refs[-1]

        k = pl.program_id(0)
        last = pl.num_programs(0) - 1

        if has_force:
            f_pred_ref, f_true_ref, idx_ref = in_refs[1 + 2 * n_energy:]
            f_loss_ref = out_refs[n_energy]
            acc_ref = scratch_refs[0]

            @pl.when(k == 0)
            def _init():
                acc_ref[...] = jnp.zeros_like(acc_ref)

            # per-atom squared error, lane-dense over atoms: (D, TN) -> (1, TN)
            diff = (f_pred_ref[...].astype(jnp.float32)
                    - f_true_ref[...].astype(jnp.float32))
            per_atom_sq = jnp.sum(diff * diff, axis=0, keepdims=True)

            # scatter-add over molecule index == one-hot matmul on the MXU
            mol_ids = jax.lax.broadcasted_iota(jnp.int32, (tn, m_pad), 1)
            onehot = (idx_ref[...] == mol_ids).astype(jnp.float32)       # (TN, M_pad)
            acc_ref[...] += jnp.dot(per_atom_sq, onehot,
                                    preferred_element_type=jnp.float32)  # (1, M_pad)

        @pl.when(k == last)
        def _finalize():
            counts = counts_ref[...]                                     # (1, M_pad)
            total = jnp.zeros((1, m_pad), jnp.float32)
            for (p_ref, t_ref), l_ref, w in zip(e_pairs, e_loss_refs, energy_weights):
                d = p_ref[...].astype(jnp.float32) - t_ref[...].astype(jnp.float32)
                l = jnp.sum(d * d, axis=0, keepdims=True) / counts
                l_ref[...] = l
                total = total + jnp.float32(w) * l
            if has_force:
                lf = acc_ref[...] / (jnp.float32(prefactor) * counts)
                f_loss_ref[...] = lf
                total = total + jnp.float32(force_weight) * lf
            total_ref[...] = total

    return kernel


# ---------------------------------------------------------------------------
# wrapper: pad / transpose to lane-dense layout and invoke the fused kernel
# ---------------------------------------------------------------------------
def fused_loss(energy_preds, energy_trues, energy_weights,
               force_pred, force_true, force_idx, force_weight,
               counts, num_molecules):
    M = int(num_molecules)
    m_pad = _round_up(max(M, 1), 128)

    counts_row = jnp.asarray(counts).astype(jnp.float32).reshape(1, M)
    counts_row = jnp.pad(counts_row, ((0, 0), (0, m_pad - M)), constant_values=1.0)

    in_arrays = [counts_row]
    in_specs = [pl.BlockSpec((1, m_pad), lambda k: (0, 0))]

    for p, t in zip(energy_preds, energy_trues):
        p2 = jnp.asarray(p).reshape(M, -1)
        t2 = jnp.asarray(t).reshape(M, -1)
        de = p2.shape[1]
        pT = jnp.pad(p2.T, ((0, 0), (0, m_pad - M)))          # (De, M_pad)
        tT = jnp.pad(t2.T, ((0, 0), (0, m_pad - M)))
        in_arrays += [pT, tT]
        in_specs += [pl.BlockSpec((de, m_pad), lambda k: (0, 0)),
                     pl.BlockSpec((de, m_pad), lambda k: (0, 0))]

    has_force = force_pred is not None
    if has_force:
        fp = jnp.asarray(force_pred)
        ft = jnp.asarray(force_true)
        N, df = fp.shape
        tn = _choose_atom_tile(N, m_pad)
        n_pad = _round_up(N, tn)
        fpT = jnp.pad(fp.T, ((0, 0), (0, n_pad - N)))         # (D, N_pad)
        ftT = jnp.pad(ft.T, ((0, 0), (0, n_pad - N)))
        idx_col = jnp.pad(jnp.asarray(force_idx).astype(jnp.int32).reshape(N, 1),
                          ((0, n_pad - N), (0, 0)))           # (N_pad, 1); pads contribute 0
        in_arrays += [fpT, ftT, idx_col]
        in_specs += [pl.BlockSpec((df, tn), lambda k: (0, k)),
                     pl.BlockSpec((df, tn), lambda k: (0, k)),
                     pl.BlockSpec((tn, 1), lambda k: (k, 0))]
        grid = (n_pad // tn,)
        prefactor = float(df)
    else:
        tn = 128
        grid = (1,)
        prefactor = 1.0

    n_energy = len(energy_preds)
    n_out = n_energy + (1 if has_force else 0) + 1

    kernel = _make_fused_kernel(
        n_energy=n_energy, has_force=has_force,
        energy_weights=tuple(float(w) for w in energy_weights),
        force_weight=float(force_weight) if has_force else 0.0,
        m_pad=m_pad, tn=tn, prefactor=prefactor)

    out_shape = tuple(jax.ShapeDtypeStruct((1, m_pad), jnp.float32)
                      for _ in range(n_out))
    out_specs = tuple(pl.BlockSpec((1, m_pad), lambda k: (0, 0))
                      for _ in range(n_out))
    scratch_shapes = [pltpu.VMEM((1, m_pad), jnp.float32)] if has_force else []

    outs = pl.pallas_call(
        kernel,
        out_shape=out_shape,
        grid_spec=pltpu.PrefetchScalarGridSpec(
            num_scalar_prefetch=0,
            grid=grid,
            in_specs=in_specs,
            out_specs=out_specs,
            scratch_shapes=scratch_shapes,
        ),
        compiler_params=pltpu.CompilerParams(
            dimension_semantics=("arbitrary",),
            vmem_limit_bytes=32 * 1024 * 1024,
        ),
    )(*in_arrays)

    # back to the torch-style (M, 1) per-molecule shape
    return [o[0, :M].reshape(M, 1) for o in outs]


# ---------------------------------------------------------------------------
# Loss module (wrapper mirroring modelforge.train.training.Loss.forward)
# ---------------------------------------------------------------------------
class PallasLoss:
    _SUPPORTED_PROPERTIES = ("per_atom_energy", "per_molecule_energy", "per_atom_force")

    def __init__(self, loss_property, weight):
        for p in loss_property:
            if p not in self._SUPPORTED_PROPERTIES:
                raise NotImplementedError(f"Loss type {p} not implemented.")
        self.loss_property = list(loss_property)
        self.weight = {k: float(v) for k, v in weight.items()}

    def __call__(self, predict_target, batch):
        M = int(batch["E"].shape[0])
        counts = batch["atomic_subsystem_counts"]
        idx = batch["atomic_subsystem_indices"]

        energy_props = [p for p in self.loss_property if p != "per_atom_force"]
        has_force = "per_atom_force" in self.loss_property

        e_preds = [predict_target[f"{p}_predict"] for p in energy_props]
        e_trues = [predict_target[f"{p}_true"] for p in energy_props]
        e_weights = [self.weight[p] for p in energy_props]

        if has_force:
            f_pred = predict_target["per_atom_force_predict"]
            f_true = predict_target["per_atom_force_true"]
            f_weight = self.weight["per_atom_force"]
        else:
            f_pred = f_true = None
            f_weight = 0.0

        outs = fused_loss(e_preds, e_trues, e_weights,
                          f_pred, f_true, idx if has_force else None, f_weight,
                          counts, M)

        named = {}
        for i, p in enumerate(energy_props):
            named[p] = outs[i]
        if has_force:
            named["per_atom_force"] = outs[len(energy_props)]

        loss_dict = {p: named[p] for p in self.loss_property}
        loss_dict["total_loss"] = outs[-1]
        return loss_dict


# ---------------------------------------------------------------------------
# Pure-JAX reference (mirrors the PyTorch semantics) for a correctness check
# ---------------------------------------------------------------------------
def _reference(predict_target, batch, loss_property, weight):
    counts = batch["atomic_subsystem_counts"].astype(jnp.float32)
    idx = batch["atomic_subsystem_indices"].astype(jnp.int32)
    M = batch["E"].shape[0]
    out = {}
    total = jnp.zeros((1,), jnp.float32)
    for prop in loss_property:
        pred = predict_target[f"{prop}_predict"].astype(jnp.float32)
        true = predict_target[f"{prop}_true"].astype(jnp.float32)
        sq = jnp.sum((pred - true) ** 2, axis=1, keepdims=True)
        if prop == "per_atom_force":
            per_mol = jnp.zeros((M, 1), jnp.float32).at[idx, 0].add(sq[:, 0])
            l = per_mol / (pred.shape[-1] * counts[:, None])
        else:
            l = sq / counts[:, None]
        out[prop] = l
        total = total + weight[prop] * l
    out["total_loss"] = total
    return out


if __name__ == "__main__":
    key = jax.random.PRNGKey(0)

    M = 8                     # molecules in the batch
    atoms_per_mol = 4
    N = M * atoms_per_mol     # total atoms
    D_force = 3

    k1, k2, k3, k4, k5, k6 = jax.random.split(key, 6)

    predict_target = {
        "per_atom_energy_predict": jax.random.normal(k1, (M, 1), jnp.float32),
        "per_atom_energy_true": jax.random.normal(k2, (M, 1), jnp.float32),
        "per_molecule_energy_predict": jax.random.normal(k3, (M, 1), jnp.float32),
        "per_molecule_energy_true": jax.random.normal(k4, (M, 1), jnp.float32),
        "per_atom_force_predict": jax.random.normal(k5, (N, D_force), jnp.float32),
        "per_atom_force_true": jax.random.normal(k6, (N, D_force), jnp.float32),
    }

    batch = {
        "E": jnp.zeros((M, 1), jnp.float32),
        "atomic_subsystem_counts": jnp.full((M,), atoms_per_mol, jnp.int32),
        "atomic_subsystem_indices": jnp.repeat(jnp.arange(M, dtype=jnp.int32), atoms_per_mol),
    }

    loss_property = ["per_atom_energy", "per_molecule_energy", "per_atom_force"]
    weight = {"per_atom_energy": 0.5, "per_molecule_energy": 1.0, "per_atom_force": 10.0}

    loss_mod = PallasLoss(loss_property, weight)
    result = loss_mod(predict_target, batch)
    result = jax.tree_util.tree_map(jax.block_until_ready, result)

    ref = _reference(predict_target, batch, loss_property, weight)
    for k in list(loss_property) + ["total_loss"]:
        assert jnp.allclose(result[k], ref[k], rtol=1e-5, atol=1e-5), k

    print("KERNEL_OK")
</pallas_src>

<mosaic_0001>
module attributes {stable_mosaic.version = 11 : i64} {
  func.func @kernel(%arg0: i32, %arg1: memref<1x128xf32, #tpu.memory_space<vmem>>, %arg2: memref<1x128xf32, #tpu.memory_space<vmem>>, %arg3: memref<1x128xf32, #tpu.memory_space<vmem>>, %arg4: memref<1x128xf32, #tpu.memory_space<vmem>>, %arg5: memref<1x128xf32, #tpu.memory_space<vmem>>, %arg6: memref<3x128xf32, #tpu.memory_space<vmem>>, %arg7: memref<3x128xf32, #tpu.memory_space<vmem>>, %arg8: memref<128x1xi32, #tpu.memory_space<vmem>>, %arg9: memref<1x128xf32, #tpu.memory_space<vmem>>, %arg10: memref<1x128xf32, #tpu.memory_space<vmem>>, %arg11: memref<1x128xf32, #tpu.memory_space<vmem>>, %arg12: memref<1x128xf32, #tpu.memory_space<vmem>>, %arg13: memref<1x128xf32, #tpu.memory_space<vmem>>) attributes {dimension_semantics = [#tpu.dimension_semantics<arbitrary>], iteration_bounds = array<i64: 1>, scalar_prefetch = 0 : i64, scratch_operands = 1 : i64, tpu.core_type = #tpu.core_type<tc>, window_params = [{pipeline_mode = #tpu.pipeline_mode<synchronous>, transform_indices = @transform_0, window_bounds = array<i64: 1, 128>}, {pipeline_mode = #tpu.pipeline_mode<synchronous>, transform_indices = @transform_1, window_bounds = array<i64: 1, 128>}, {pipeline_mode = #tpu.pipeline_mode<synchronous>, transform_indices = @transform_2, window_bounds = array<i64: 1, 128>}, {pipeline_mode = #tpu.pipeline_mode<synchronous>, transform_indices = @transform_3, window_bounds = array<i64: 1, 128>}, {pipeline_mode = #tpu.pipeline_mode<synchronous>, transform_indices = @transform_4, window_bounds = array<i64: 1, 128>}, {transform_indices = @transform_5, window_bounds = array<i64: 3, 128>}, {transform_indices = @transform_6, window_bounds = array<i64: 3, 128>}, {transform_indices = @transform_7, window_bounds = array<i64: 128, 1>}, {pipeline_mode = #tpu.pipeline_mode<synchronous>, transform_indices = @transform_8, window_bounds = array<i64: 1, 128>}, {pipeline_mode = #tpu.pipeline_mode<synchronous>, transform_indices = @transform_9, window_bounds = array<i64: 1, 128>}, {pipeline_mode = #tpu.pipeline_mode<synchronous>, transform_indices = @transform_10, window_bounds = array<i64: 1, 128>}, {pipeline_mode = #tpu.pipeline_mode<synchronous>, transform_indices = @transform_11, window_bounds = array<i64: 1, 128>}]} {
    %c0_i32 = arith.constant 0 : i32
    %0 = arith.cmpi eq, %arg0, %c0_i32 : i32
    %1 = arith.extui %0 : i1 to i32
    %c0_i32_0 = arith.constant 0 : i32
    %2 = arith.cmpi ne, %1, %c0_i32_0 : i32
    scf.if %2 {
      %cst_13 = arith.constant 0.000000e+00 : f32
      %22 = vector.broadcast %cst_13 : f32 to vector<1x128xf32>
      %c0_14 = arith.constant 0 : index
      %c0_15 = arith.constant 0 : index
      %23 = vector.load %arg13[%c0_14, %c0_15] : memref<1x128xf32, #tpu.memory_space<vmem>>, vector<1x128xf32>
      tpu.vector_store %arg13[%c0_14, %c0_15], %22 {strides = array<i32>} : memref<1x128xf32, #tpu.memory_space<vmem>>, vector<1x128xf32>,
    } else {
    }
    %c0 = arith.constant 0 : index
    %c0_1 = arith.constant 0 : index
    %3 = vector.load %arg6[%c0, %c0_1] : memref<3x128xf32, #tpu.memory_space<vmem>>, vector<3x128xf32>
    %c0_2 = arith.constant 0 : index
    %c0_3 = arith.constant 0 : index
    %4 = vector.load %arg7[%c0_2, %c0_3] : memref<3x128xf32, #tpu.memory_space<vmem>>, vector<3x128xf32>
    %5 = arith.subf %3, %4 : vector<3x128xf32>
    %6 = arith.mulf %5, %5 : vector<3x128xf32>
    %cst = arith.constant dense<0.000000e+00> : vector<128xf32>
    %7 = vector.multi_reduction <add>, %6, %cst [0] : vector<3x128xf32> to vector<128xf32>
    %8 = vector.shape_cast %7 : vector<128xf32> to vector<1x128xf32>
    %9 = tpu.iota {dimensions = array<i32: 1>} : vector<128x128xi32>
    %c0_4 = arith.constant 0 : index
    %c0_5 = arith.constant 0 : index
    %10 = vector.load %arg8[%c0_4, %c0_5] : memref<128x1xi32, #tpu.memory_space<vmem>>, vector<128x1xi32>
    %11 = vector.broadcast %10 : vector<128x1xi32> to vector<128x128xi32>
    %12 = arith.cmpi eq, %11, %9 : vector<128x128xi32>
    %13 = arith.extui %12 : vector<128x128xi1> to vector<128x128xi32>
    %14 = arith.sitofp %13 : vector<128x128xi32> to vector<128x128xf32>
    %c0_6 = arith.constant 0 : index
    %c0_7 = arith.constant 0 : index
    %15 = vector.load %arg13[%c0_6, %c0_7] : memref<1x128xf32, #tpu.memory_space<vmem>>, vector<1x128xf32>
    %cst_8 = arith.constant dense<0.000000e+00> : vector<1x128xf32>
    %16 = tpu.matmul %8, %14, %cst_8 {dimension_numbers = #tpu.dot_dimension_numbers<[1], [0], [0], [1], [0, 0, 1, 1], [], []>} : vector<1x128xf32>, vector<128x128xf32>, vector<1x128xf32> -> vector<1x128xf32>
    %17 = arith.addf %15, %16 : vector<1x128xf32>
    %c0_9 = arith.constant 0 : index
    %c0_10 = arith.constant 0 : index
    %18 = vector.load %arg13[%c0_9, %c0_10] : memref<1x128xf32, #tpu.memory_space<vmem>>, vector<1x128xf32>
    tpu.vector_store %arg13[%c0_9, %c0_10], %17 {strides = array<i32>} : memref<1x128xf32, #tpu.memory_space<vmem>>, vector<1x128xf32>,
    %c0_i32_11 = arith.constant 0 : i32
    %19 = arith.cmpi eq, %arg0, %c0_i32_11 : i32
    %20 = arith.extui %19 : i1 to i32
    %c0_i32_12 = arith.constant 0 : i32
    %21 = arith.cmpi ne, %20, %c0_i32_12 : i32
    scf.if %21 {
      %c0_13 = arith.constant 0 : index
      %c0_14 = arith.constant 0 : index
      %22 = vector.load %arg1[%c0_13, %c0_14] : memref<1x128xf32, #tpu.memory_space<vmem>>, vector<1x128xf32>
      %cst_15 = arith.constant 0.000000e+00 : f32
      %23 = vector.broadcast %cst_15 : f32 to vector<1x128xf32>
      %c0_16 = arith.constant 0 : index
      %c0_17 = arith.constant 0 : index
      %24 = vector.load %arg2[%c0_16, %c0_17] : memref<1x128xf32, #tpu.memory_space<vmem>>, vector<1x128xf32>
      %c0_18 = arith.constant 0 : index
      %c0_19 = arith.constant 0 : index
      %25 = vector.load %arg3[%c0_18, %c0_19] : memref<1x128xf32, #tpu.memory_space<vmem>>, vector<1x128xf32>
      %26 = arith.subf %24, %25 : vector<1x128xf32>
      %27 = arith.mulf %26, %26 : vector<1x128xf32>
      %cst_20 = arith.constant dense<0.000000e+00> : vector<128xf32>
      %28 = vector.multi_reduction <add>, %27, %cst_20 [0] : vector<1x128xf32> to vector<128xf32>
      %29 = vector.shape_cast %28 : vector<128xf32> to vector<1x128xf32>
      %30 = arith.divf %29, %22 : vector<1x128xf32>
      %c0_21 = arith.constant 0 : index
      %c0_22 = arith.constant 0 : index
      %31 = vector.load %arg9[%c0_21, %c0_22] : memref<1x128xf32, #tpu.memory_space<vmem>>, vector<1x128xf32>
      tpu.vector_store %arg9[%c0_21, %c0_22], %30 {strides = array<i32>} : memref<1x128xf32, #tpu.memory_space<vmem>>, vector<1x128xf32>,
      %cst_23 = arith.constant 5.000000e-01 : f32
      %32 = vector.broadcast %cst_23 : f32 to vector<1x128xf32>
      %33 = arith.mulf %32, %30 : vector<1x128xf32>
      %34 = arith.addf %23, %33 : vector<1x128xf32>
      %c0_24 = arith.constant 0 : index
      %c0_25 = arith.constant 0 : index
      %35 = vector.load %arg4[%c0_24, %c0_25] : memref<1x128xf32, #tpu.memory_space<vmem>>, vector<1x128xf32>
      %c0_26 = arith.constant 0 : index
      %c0_27 = arith.constant 0 : index
      %36 = vector.load %arg5[%c0_26, %c0_27] : memref<1x128xf32, #tpu.memory_space<vmem>>, vector<1x128xf32>
      %37 = arith.subf %35, %36 : vector<1x128xf32>
      %38 = arith.mulf %37, %37 : vector<1x128xf32>
      %cst_28 = arith.constant dense<0.000000e+00> : vector<128xf32>
      %39 = vector.multi_reduction <add>, %38, %cst_28 [0] : vector<1x128xf32> to vector<128xf32>
      %40 = vector.shape_cast %39 : vector<128xf32> to vector<1x128xf32>
      %41 = arith.divf %40, %22 : vector<1x128xf32>
      %c0_29 = arith.constant 0 : index
      %c0_30 = arith.constant 0 : index
      %42 = vector.load %arg10[%c0_29, %c0_30] : memref<1x128xf32, #tpu.memory_space<vmem>>, vector<1x128xf32>
      tpu.vector_store %arg10[%c0_29, %c0_30], %41 {strides = array<i32>} : memref<1x128xf32, #tpu.memory_space<vmem>>, vector<1x128xf32>,
      %cst_31 = arith.constant 1.000000e+00 : f32
      %43 = vector.broadcast %cst_31 : f32 to vector<1x128xf32>
      %44 = arith.mulf %43, %41 : vector<1x128xf32>
      %45 = arith.addf %34, %44 : vector<1x128xf32>
      %c0_32 = arith.constant 0 : index
      %c0_33 = arith.constant 0 : index
      %46 = vector.load %arg13[%c0_32, %c0_33] : memref<1x128xf32, #tpu.memory_space<vmem>>, vector<1x128xf32>
      %cst_34 = arith.constant 3.000000e+00 : f32
      %47 = vector.broadcast %cst_34 : f32 to vector<1x128xf32>
      %48 = arith.mulf %47, %22 : vector<1x128xf32>
      %49 = arith.divf %46, %48 : vector<1x128xf32>
      %c0_35 = arith.constant 0 : index
      %c0_36 = arith.constant 0 : index
      %50 = vector.load %arg11[%c0_35, %c0_36] : memref<1x128xf32, #tpu.memory_space<vmem>>, vector<1x128xf32>
      tpu.vector_store %arg11[%c0_35, %c0_36], %49 {strides = array<i32>} : memref<1x128xf32, #tpu.memory_space<vmem>>, vector<1x128xf32>,
      %cst_37 = arith.constant 1.000000e+01 : f32
      %51 = vector.broadcast %cst_37 : f32 to vector<1x128xf32>
      %52 = arith.mulf %51, %49 : vector<1x128xf32>
      %53 = arith.addf %45, %52 : vector<1x128xf32>
      %c0_38 = arith.constant 0 : index
      %c0_39 = arith.constant 0 : index
      %54 = vector.load %arg12[%c0_38, %c0_39] : memref<1x128xf32, #tpu.memory_space<vmem>>, vector<1x128xf32>
      tpu.vector_store %arg12[%c0_38, %c0_39], %53 {strides = array<i32>} : memref<1x128xf32, #tpu.memory_space<vmem>>, vector<1x128xf32>,
    } else {
    }
    return
  }
  func.func @transform_0(%arg0: i32) -> (i32, i32) {
    %c0_i32 = arith.constant 0 : i32
    %c0_i32_0 = arith.constant 0 : i32
    %c0_i32_1 = arith.constant 0 : i32
    return %c0_i32, %c0_i32_0 : i32, i32
  }
  func.func @transform_1(%arg0: i32) -> (i32, i32) {
    %c0_i32 = arith.constant 0 : i32
    %c0_i32_0 = arith.constant 0 : i32
    %c0_i32_1 = arith.constant 0 : i32
    return %c0_i32, %c0_i32_0 : i32, i32
  }
  func.func @transform_2(%arg0: i32) -> (i32, i32) {
    %c0_i32 = arith.constant 0 : i32
    %c0_i32_0 = arith.constant 0 : i32
    %c0_i32_1 = arith.constant 0 : i32
    return %c0_i32, %c0_i32_0 : i32, i32
  }
  func.func @transform_3(%arg0: i32) -> (i32, i32) {
    %c0_i32 = arith.constant 0 : i32
    %c0_i32_0 = arith.constant 0 : i32
    %c0_i32_1 = arith.constant 0 : i32
    return %c0_i32, %c0_i32_0 : i32, i32
  }
  func.func @transform_4(%arg0: i32) -> (i32, i32) {
    %c0_i32 = arith.constant 0 : i32
    %c0_i32_0 = arith.constant 0 : i32
    %c0_i32_1 = arith.constant 0 : i32
    return %c0_i32, %c0_i32_0 : i32, i32
  }
  func.func @transform_5(%arg0: i32) -> (i32, i32) {
    %c0_i32 = arith.constant 0 : i32
    %c0_i32_0 = arith.constant 0 : i32
    return %c0_i32, %arg0 : i32, i32
  }
  func.func @transform_6(%arg0: i32) -> (i32, i32) {
    %c0_i32 = arith.constant 0 : i32
    %c0_i32_0 = arith.constant 0 : i32
    return %c0_i32, %arg0 : i32, i32
  }
  func.func @transform_7(%arg0: i32) -> (i32, i32) {
    %c0_i32 = arith.constant 0 : i32
    %c0_i32_0 = arith.constant 0 : i32
    return %arg0, %c0_i32 : i32, i32
  }
  func.func @transform_8(%arg0: i32) -> (i32, i32) {
    %c0_i32 = arith.constant 0 : i32
    %c0_i32_0 = arith.constant 0 : i32
    %c0_i32_1 = arith.constant 0 : i32
    return %c0_i32, %c0_i32_0 : i32, i32
  }
  func.func @transform_9(%arg0: i32) -> (i32, i32) {
    %c0_i32 = arith.constant 0 : i32
    %c0_i32_0 = arith.constant 0 : i32
    %c0_i32_1 = arith.constant 0 : i32
    return %c0_i32, %c0_i32_0 : i32, i32
  }
  func.func @transform_10(%arg0: i32) -> (i32, i32) {
    %c0_i32 = arith.constant 0 : i32
    %c0_i32_0 = arith.constant 0 : i32
    %c0_i32_1 = arith.constant 0 : i32
    return %c0_i32, %c0_i32_0 : i32, i32
  }
  func.func @transform_11(%arg0: i32) -> (i32, i32) {
    %c0_i32 = arith.constant 0 : i32
    %c0_i32_0 = arith.constant 0 : i32
    %c0_i32_1 = arith.constant 0 : i32
    return %c0_i32, %c0_i32_0 : i32, i32
  }
}

</mosaic_0001>

<bundles_post_ra>
// kernel: tpu_custom_call.1
= control target key start
LH: loop header
LB: loop body
LE: loop exit
PB: predicated region body
PF: predicated region fallthrough
CT: control target
= control target key end

     0   :  { %17 = vsyncpa [#allocation4], 0  ;;  %s629_s0 = inlined_call_operand.vmem [shape: f32[1,128], index: 0, kind: input, shape index: {}]   ;;  %s630_s1 = inlined_call_operand.vmem [shape: f32[1,128], index: 1, kind: input, shape index: {}]   ;;  %s631_s2 = inlined_call_operand.vmem [shape: f32[1,128], index: 2, kind: input, shape index: {}]   ;;  %s632_s3 = inlined_call_operand.vmem [shape: f32[1,128], index: 3, kind: input, shape index: {}]   ;;  %s633_s4 = inlined_call_operand.vmem [shape: f32[1,128], index: 4, kind: input, shape index: {}]   ;;  %s634_s5 = inlined_call_operand.vmem [shape: f32[3,128], index: 5, kind: input, shape index: {}]   ;;  %s635_s6 = inlined_call_operand.vmem [shape: f32[3,128], index: 6, kind: input, shape index: {}]   ;;  %s636_s7 = inlined_call_operand.vmem [shape: s32[128,1], index: 7, kind: input, shape index: {}]   ;;  %s637_s8 = inlined_call_operand.hbm [shape: f32[1,128], index: 8, kind: output, shape index: {0}]   ;;  %s638_s9 = inlined_call_operand.hbm [shape: f32[1,128], index: 9, kind: output, shape index: {1}]   ;;  %s639_s10 = inlined_call_operand.hbm [shape: f32[1,128], index: 10, kind: output, shape index: {2}]   ;;  %s640_s11 = inlined_call_operand.hbm [shape: f32[1,128], index: 11, kind: output, shape index: {3}]  }
   0x1   :  { %18 = vsyncpa [#allocation6], 0  ;;  %v70_v0 = vld [vmem:[%s636_s7 + $0x78] sm:$0xff]  ;;  %v68_v1 = vld [vmem:[%s636_s7 + $0x68] sm:$0xff]  ;;  %v457_v3 = vmov 0  }
   0x2   :  { %v66_v2 = vld [vmem:[%s636_s7 + $0x58] sm:$0xff]  ;;  %350 = vset.pattern.permute.xlu2 %v457_v3  ;;  %349 = vset.pattern.permute.xlu1 %v457_v3 }
   0x3   :  { %348 = vset.pattern.permute.xlu0 %v457_v3  ;;  %111 = vperm.xlu1 %349, %v68_v1  }
   0x4   :  { %117 = vperm.xlu0 %348, %v70_v0   ;;  %105 = vperm.xlu2 %350, %v66_v2  }
   0x5   :  { %19 = vsyncpa [#allocation9], 0  ;;  %v67_v4 = vld [vmem:[%s636_s7 + $0x60] sm:$0xff]  ;;  %v69_v5 = vld [vmem:[%s636_s7 + $0x70] sm:$0xff]  ;;  %v53_v17 = vlaneseq  ;;  %v458_v22 = vmov 1.0   ;;  %v459_v30 = vmov 0.0  }
   0x6   :  { %v65_v6 = vld [vmem:[%s636_s7 + $0x50] sm:$0xff]  ;;  %v63_v7 = vld [vmem:[%s636_s7 + $0x40] sm:$0xff]  ;;  %v64_v8 = vld [vmem:[%s636_s7 + $0x48] sm:$0xff]  ;;  %40 = vst [vmem:[#allocation2] sm:$0x1] %v459_v30  ;;  %vm45_vm4 = vcmask 1042432  }
   0x7   :  { %v62_v9 = vld [vmem:[%s636_s7 + $0x38] sm:$0xff]  ;;  %v60_v10 = vld [vmem:[%s636_s7 + $0x28] sm:$0xff]  ;;  %v61_v11 = vld [vmem:[%s636_s7 + $0x30] sm:$0xff]  ;;  %v572_v19 = vand.u32 127, %v53_v17  ;;  %s264_s23 = sshll.u32 %s638_s9, 4  ;;  %s275_s29 = sshll.u32 %s639_s10, 4  ;;  %s265_s23 = int_to_ptr.hbm [resolvable:$true] %s264_s23  ;;  %s276_s29 = int_to_ptr.hbm [resolvable:$true] %s275_s29 }
   0x8   :  { %v59_v12 = vld [vmem:[%s636_s7 + $0x20] sm:$0xff]  ;;  %v57_v13 = vld [vmem:[%s636_s7 + $0x10] sm:$0xff]  ;;  %v58_v14 = vld [vmem:[%s636_s7 + $0x18] sm:$0xff]  ;;  %s463_s30 = smov [#allocation8]  }
   0x9   :  { %v56_v15 = vld [vmem:[%s636_s7 + $0x8] sm:$0xff]  ;;  %v55_v16 = vld [vmem:[%s636_s7] sm:$0xff]  ;;  %s284_s12 = sshll.u32 %s463_s30, 4  ;;  %s285_s12 = int_to_ptr.vmem [resolvable:$true] %s284_s12 }
   0xa   :  { %v41_v24 = vld [vmem:[%s634_s5] sm:$0x7]  ;;  %s286_s5 = sshll.u32 %s640_s11, 4  ;;  %s287_s5 = int_to_ptr.hbm [resolvable:$true] %s286_s5 }
   0xb   :  { %108 = vperm.xlu1 %349, %v67_v4   ;;  %v42_v25 = vld [vmem:[%s635_s6] sm:$0x7] }
   0xc   :  { %114 = vperm.xlu0 %348, %v69_v5   ;;  %102 = vperm.xlu2 %350, %v65_v6   ;;  %v43_v28 = vsub.f32 %v41_v24, %v42_v25  ;;  %v193_v48 = vld [vmem:[%s629_s0] sm:$0x1] }
   0xd   :  { %351 = vrcp.f32 %v193_v48  ;;  %v208_v53 = vand.u32 2147483647, %v193_v48  ;;  %v217_v54 = vld [vmem:[%s632_s3] sm:$0x1]  ;;  %v210_v57 = vand.u32 2147483648, %v193_v48  ;;  %s460_s3 = smov [#allocation5]  }
   0xe   :  { %v44_v29 = vmul.f32 %v43_v28, %v43_v28  ;;  %v218_v55 = vld [vmem:[%s633_s4] sm:$0x1]  ;;  %s262_s4 = sshll.u32 %s460_s3, 4  ;;  %v226_v4 = vmul.f32 3.0, %v193_v48  ;;  %s263_s4 = int_to_ptr.vmem [resolvable:$true] %s262_s4 }
   0xf   :  { %v219_v58 = vsub.f32 %v217_v54, %v218_v55  ;;  %v194_v59 = vld [vmem:[%s630_s1] sm:$0x1]  ;;  %v211_v63 = vor.u32 1.1754944e-38, %v210_v57  ;;  %s461_s1 = smov [#allocation3]  }
  0x10   :  { %v46_v34 = vsel %vm45_vm4, %v44_v29, 0.0  ;;  %v195_v60 = vld [vmem:[%s631_s2] sm:$0x1]  ;;  %vm209_vm4 = vcmp.eq.f32.partialorder %v208_v53, 8.507059e+37  ;;  %s251_s24 = sshll.u32 %s461_s1, 4  ;;  %s253_s2 = sshll.u32 %s637_s8, 4  ;;  %353 = vrcp.f32 %v226_v4  ;;  %s252_s24 = int_to_ptr.vmem [resolvable:$true] %s251_s24  ;;  %s254_s2 = int_to_ptr.hbm [resolvable:$true] %s253_s2 }
  0x11   :  { %v47_v35 = vrot.slane %v46_v34, 4  ;;  %v196_v62 = vsub.f32 %v194_v59, %v195_v60  ;;  %v220_v0 = vmul.f32 %v219_v58, %v219_v58  ;;  %s462_s8 = smov [#allocation7]  }
  0x12   :  { %s273_s9 = sshll.u32 %s462_s8, 4  ;;  %s274_s9 = int_to_ptr.vmem [resolvable:$true] %s273_s9 }
  0x13   :  { %96 = vperm.xlu1 %349, %v63_v7   ;;  %v48_v37 = vadd.f32 %v47_v35, %v46_v34  ;;  %v352_v49 = vpop.eup %351  ;;  %v197_v2 = vmul.f32 %v196_v62, %v196_v62 }
  0x14   :  { %99 = vperm.xlu0 %348, %v64_v8   ;;  %93 = vperm.xlu2 %350, %v62_v9   ;;  %v200_v50 = vmul.f32 %v352_v49, %v193_v48 }
  0x15   :  { %v49_v40 = vrot.slane %v48_v37, 2 }
  0x16   :  { %v201_v51 = vsub.f32 1.0, %v200_v50  ;;  %v354_v7 = vpop.eup %353 }
  0x17   :  { %v50_v41 = vadd.f32 %v49_v40, %v48_v37  ;;  %v228_v8 = vmul.f32 %v354_v7, %v226_v4 }
  0x18   :  { %v202_v52 = vmul.f32 %v352_v49, %v201_v51 }
  0x19   :  { %v51_v45 = vrot.slane %v50_v41, 1  ;;  %v229_v9 = vsub.f32 1.0, %v228_v8 }
  0x1a   :  { %v203_v61 = vadd.f32 %v352_v49, %v202_v52 }
  0x1b   :  { %87 = vperm.xlu1 %349, %v60_v10   ;;  %v52_v46 = vadd.f32 %v51_v45, %v50_v41  ;;  %v230_v10 = vmul.f32 %v354_v7, %v229_v9 }
  0x1c   :  { %90 = vperm.xlu0 %348, %v61_v11   ;;  %84 = vperm.xlu2 %350, %v59_v12   ;;  %v167_v11 = vld [vmem:[#allocation2] sm:$0x1] }
  0x23   :  { %78 = vperm.xlu1 %349, %v57_v13   ;;  %v238_v13 = vand.u32 2147483648, %v226_v4 }
  0x24   :  { %81 = vperm.xlu0 %348, %v58_v14   ;;  %75 = vperm.xlu2 %350, %v56_v15   ;;  %v231_v15 = vadd.f32 %v354_v7, %v230_v10 }
  0x25   :  { %v239_v17 = vor.u32 1.1754944e-38, %v238_v13 }
  0x2c   :  { %72 = vperm.xlu0 %348, %v55_v16   ;;  %v236_v16 = vand.u32 2147483647, %v226_v4 }
  0x5e   :  { %v106_v18 = vpop.permute.xlu2 %105 }
  0x5f   :  { %vm130_vm5 = vcmp.eq.s32.totalorder %v106_v18, %v572_v19 }
  0x66   :  { %v103_v23 = vpop.permute.xlu2 %102 }
  0x67   :  { %vm129_vm6 = vcmp.eq.s32.totalorder %v103_v23, %v572_v19 }
  0x6e   :  { %v94_v31 = vpop.permute.xlu2 %93 }
  0x6f   :  { %vm126_vm9 = vcmp.eq.s32.totalorder %v94_v31, %v572_v19 }
  0x75   :  { %v112_v20 = vpop.permute.xlu1 %111 }
  0x76   :  { %v118_v21 = vpop.permute.xlu0 %117  ;;  %vm132_vm2 = vcmp.eq.s32.totalorder %v112_v20, %v572_v19  ;;  %v85_v38 = vpop.permute.xlu2 %84 }
  0x77   :  { %vm134_vm0 = vcmp.eq.s32.totalorder %v118_v21, %v572_v19  ;;  %vm123_vm12 = vcmp.eq.s32.totalorder %v85_v38, %v572_v19 }
  0x78   :  { %325 = vmatpush.msk.msra.mxu0 %vm134_vm0, %v458_v22 }
  0x7d   :  { %v109_v26 = vpop.permute.xlu1 %108 }
  0x7e   :  { %v115_v27 = vpop.permute.xlu0 %114  ;;  %vm131_vm3 = vcmp.eq.s32.totalorder %v109_v26, %v572_v19  ;;  %v76_v44 = vpop.permute.xlu2 %75 }
  0x7f   :  { %vm133_vm1 = vcmp.eq.s32.totalorder %v115_v27, %v572_v19  ;;  %vm120_vm15 = vcmp.eq.s32.totalorder %v76_v44, %v572_v19 }
  0x80   :  { %326 = vmatpush.msk.msra.mxu0 %vm133_vm1, %v458_v22  ;;  %vm204_vm1 = vweird.f32 %v193_v48 }
  0x82   :  { %327 = vmatpush.msk.msra.mxu0 %vm132_vm2, %v458_v22  ;;  %vm205_vm2 = vweird.f32 %v352_v49 }
  0x84   :  { %328 = vmatpush.msk.msra.mxu0 %vm131_vm3, %v458_v22  ;;  %vm605_vm3 = vmor %vm204_vm1, %vm205_vm2 }
  0x85   :  { %v97_v32 = vpop.permute.xlu1 %96  ;;  %v207_v1 = vsel %vm605_vm3, %v352_v49, %v203_v61 }
  0x86   :  { %v100_v33 = vpop.permute.xlu0 %99  ;;  %329 = vmatpush.msk.msra.mxu0 %vm130_vm5, %v458_v22  ;;  %vm127_vm8 = vcmp.eq.s32.totalorder %v97_v32, %v572_v19  ;;  %v212_v3 = vsel %vm209_vm4, %v211_v63, %v207_v1  ;;  %vm232_vm5 = vweird.f32 %v226_v4 }
  0x87   :  { %vm128_vm7 = vcmp.eq.s32.totalorder %v100_v33, %v572_v19  ;;  %v222_v5 = vmul.f32 %v220_v0, %v212_v3  ;;  %v213_v6 = vmul.f32 %v212_v3, %v197_v2 }
  0x88   :  { %330 = vmatpush.msk.msra.mxu0 %vm129_vm6, %v458_v22  ;;  %vm233_vm6 = vweird.f32 %v354_v7 }
  0x89   :  { %223 = vst [vmem:[#allocation5] sm:$0x1] %v222_v5 }
  0x8a   :  { %331 = vmatpush.msk.msra.mxu0 %vm128_vm7, %v458_v22  ;;  %267 = dma.vmem_to_hbm [thread:$0]  %s263_s4, 16, %s265_s23, [#allocation6]   ;;  %214 = vst [vmem:[#allocation3] sm:$0x1] %v213_v6  ;;  %vm234_vm7 = vmor %vm232_vm5, %vm233_vm6 }
  0x8b   :  { %256 = dma.vmem_to_hbm [thread:$0]  %s252_s24, 16, %s254_s2, [#allocation4]   ;;  %v235_v18 = vsel %vm234_vm7, %v354_v7, %v231_v15 }
  0x8c   :  { %332 = vmatpush.msk.msra.mxu0 %vm127_vm8, %v458_v22  ;;  %vm237_vm8 = vcmp.eq.f32.partialorder %v236_v16, 8.507059e+37 }
  0x8d   :  { %v88_v36 = vpop.permute.xlu1 %87  ;;  %v240_v20 = vsel %vm237_vm8, %v239_v17, %v235_v18 }
  0x8e   :  { %v91_v39 = vpop.permute.xlu0 %90  ;;  %333 = vmatpush.msk.msra.mxu0 %vm126_vm9, %v458_v22  ;;  %vm124_vm11 = vcmp.eq.s32.totalorder %v88_v36, %v572_v19 }
  0x8f   :  { %vm125_vm10 = vcmp.eq.s32.totalorder %v91_v39, %v572_v19 }
  0x90   :  { %334 = vmatpush.msk.msra.mxu0 %vm125_vm10, %v458_v22 }
  0x92   :  { %335 = vmatpush.msk.msra.mxu0 %vm124_vm11, %v458_v22 }
  0x94   :  { %336 = vmatpush.msk.msra.mxu0 %vm123_vm12, %v458_v22 }
  0x95   :  { %v79_v43 = vpop.permute.xlu1 %78 }
  0x96   :  { %v82_v42 = vpop.permute.xlu0 %81  ;;  %vm121_vm14 = vcmp.eq.s32.totalorder %v79_v43, %v572_v19 }
  0x97   :  { %vm122_vm13 = vcmp.eq.s32.totalorder %v82_v42, %v572_v19 }
  0x98   :  { %337 = vmatpush.msk.msra.mxu0 %vm122_vm13, %v458_v22 }
  0x9a   :  { %338 = vmatpush.msk.msra.mxu0 %vm121_vm14, %v458_v22 }
  0x9c   :  { %339 = vmatpush.msk.msra.mxu0 %vm120_vm15, %v458_v22 }
  0x9e   :  { %v73_v47 = vpop.permute.xlu0 %72 }
  0x9f   :  { %vm119_vm0 = vcmp.eq.s32.totalorder %v73_v47, %v572_v19  ;;  %v215_v19 = vmul.f32 0.5, %v213_v6 }
  0xa0   :  { %340 = vmatpush.msk.msra.mxu0 %vm119_vm0, %v458_v22 }
  0xa1   :  { %184 = vmatmul.f32.vlgmr.msra.gmra.mxu0 %v52_v46  ;;  %v224_v23 = vadd.f32 %v222_v5, %v215_v19 }
 0x11e   :  { %v185_v12 = vpop.f32.mrf.mxu0 }
 0x11f   :  { %v188_v14 = vadd.f32 %v185_v12, %v167_v11 }
 0x121   :  { %189 = vst [vmem:[#allocation2] sm:$0x1] %v188_v14 }
 0x128   :  { %v225_v21 = vld [vmem:[#allocation2] sm:$0x1] }
 0x129   :  { %v241_v22 = vmul.f32 %v240_v20, %v225_v21 }
 0x12b   :  { %242 = vst [vmem:[#allocation7] sm:$0x1] %v241_v22  ;;  %v243_v24 = vmul.f32 10.0, %v241_v22 }
 0x12c   :  { %278 = dma.vmem_to_hbm [thread:$0]  %s274_s9, 16, %s276_s29, [#allocation6]  }
 0x12d   :  { %v244_v25 = vadd.f32 %v243_v24, %v224_v23 }
 0x12f   :  { %245 = vst [vmem:[#allocation8] sm:$0x1] %v244_v25 }
 0x130   :  { %289 = dma.vmem_to_hbm [thread:$0]  %s285_s12, 16, %s287_s5, [#allocation9]  }
 0x131   :  { %451 = dma.done.wait [#allocation4], 16  }
 0x132   :  { %452 = vsyncadd [#allocation4], 4294967280 }
 0x133   :  { %453 = dma.done.wait [#allocation6], 32  }
 0x134   :  { %454 = vsyncadd [#allocation6], 4294967264 }
 0x135   :  { %455 = dma.done.wait [#allocation9], 16  }
 0x136   :  { %456 = vsyncadd [#allocation9], 4294967280 }
 0x137   :  { %306 = vsyncpa [#allocation4], 1 }
 0x138   :  { %307 = vsyncpa [#allocation6], 1 }
 0x139   :  { %308 = vsyncpa [#allocation9], 1 }

</bundles_post_ra>
